<compile_context>
chip_gen: v5e
topology: v5e:2x2
jax: 0.10.0
libtpu: 0.0.40
codegen_flags: <defaults>
</compile_context>

<pallas_src>
import jax
import jax.numpy as jnp
from jax.experimental import pallas as pl
from jax.experimental.pallas import tpu as pltpu


# ----------------------------------------------------------------------------
# Pallas kernel: fused 5-layer MLP
#   h = relu(h @ W_i + b_i)   (BN already folded into W_i, b_i)   i = 1..4
#   out = sigmoid(h @ W_out + b_out)                                (padded N)
# ----------------------------------------------------------------------------
def cvr_mlp_kernel(
    x_ref,
    w1_ref, b1_ref,
    w2_ref, b2_ref,
    w3_ref, b3_ref,
    w4_ref, b4_ref,
    w5_ref, b5_ref,
    out_ref,
):
    h = x_ref[...]  # f32 (TB, D0_pad)
    hidden = (
        (w1_ref, b1_ref),
        (w2_ref, b2_ref),
        (w3_ref, b3_ref),
        (w4_ref, b4_ref),
    )
    for w_ref, b_ref in hidden:
        # bf16 x bf16 -> f32 accumulate on the MXU.
        h = jnp.dot(h.astype(jnp.bfloat16), w_ref[...],
                    preferred_element_type=jnp.float32)
        # bias add + ReLU in f32 (BN folded, Dropout identity in eval).
        h = jnp.maximum(h + b_ref[...], 0.0)

    logits = jnp.dot(h.astype(jnp.bfloat16), w5_ref[...],
                     preferred_element_type=jnp.float32) + b5_ref[...]
    out_ref[...] = jax.nn.sigmoid(logits)  # lane-dense (TB, 128) store


def _round_up(x, m):
    return ((x + m - 1) // m) * m


def cvr_network_forward(x, params, *, num_classes, block_batch=256):
    """x: (B, D0) float32.  params: BN-folded / padded / bf16 weight list."""
    B, d0 = x.shape
    d0_pad = params[0].shape[0]       # padded input feature dim (128)
    n_out_pad = params[-1].shape[-1]  # padded output lane dim (128)

    tb = min(block_batch, _round_up(B, 8))
    num_blocks = pl.cdiv(B, tb)
    b_pad = num_blocks * tb

    # Zero-pad batch to a tile multiple and features to the padded width
    # (exact: padded feature columns hit zero rows of W1).
    x_p = jnp.zeros((b_pad, d0_pad), jnp.float32).at[:B, :d0].set(x)

    act_spec = pl.BlockSpec((tb, d0_pad), lambda i: (i, 0))
    out_spec = pl.BlockSpec((tb, n_out_pad), lambda i: (i, 0))
    # Weights / biases: full blocks, same index every step -> stay resident.
    param_specs = [pl.BlockSpec(p.shape, lambda i: (0, 0)) for p in params]

    out = pl.pallas_call(
        cvr_mlp_kernel,
        out_shape=jax.ShapeDtypeStruct((b_pad, n_out_pad), jnp.float32),
        grid=(num_blocks,),
        in_specs=[act_spec] + param_specs,
        out_specs=out_spec,
        compiler_params=pltpu.CompilerParams(
            dimension_semantics=("parallel",),
        ),
    )(x_p, *params)

    return out[:B, :num_classes]


# ----------------------------------------------------------------------------
# Parameter construction (mirrors CvrNetwork.__init__ shapes, eval-mode BN)
# ----------------------------------------------------------------------------
def make_torch_like_params(key, input_dims, hid_dims, num_classes):
    """Raw per-layer params: Linear (W, b) + BatchNorm1d (gamma, beta, mean, var)."""
    all_dims = [input_dims] + list(hid_dims)
    layers = []
    for i in range(1, len(all_dims)):
        d_in, d_out = all_dims[i - 1], all_dims[i]
        key, kw, kb, kg, kbe, km, kv = jax.random.split(key, 7)
        layers.append(dict(
            w=jax.random.normal(kw, (d_in, d_out), jnp.float32) / jnp.sqrt(d_in),
            b=0.01 * jax.random.normal(kb, (1, d_out), jnp.float32),
            gamma=1.0 + 0.1 * jax.random.normal(kg, (1, d_out), jnp.float32),
            beta=0.1 * jax.random.normal(kbe, (1, d_out), jnp.float32),
            mean=0.1 * jax.random.normal(km, (1, d_out), jnp.float32),
            var=jnp.abs(jax.random.normal(kv, (1, d_out), jnp.float32)) + 0.5,
        ))
    d_last = all_dims[-1]
    key, kw, kb = jax.random.split(key, 3)
    w_out = jax.random.normal(kw, (d_last, num_classes), jnp.float32) / jnp.sqrt(d_last)
    b_out = 0.01 * jax.random.normal(kb, (1, num_classes), jnp.float32)
    return layers, (w_out, b_out)


def prepare_kernel_params(layers, head, *, d0_pad=128, n_out_pad=128, bn_eps=1e-5):
    """Fold BN into Linear, pad input / output dims, cast weights to bf16."""
    params = []
    for idx, L in enumerate(layers):
        scale = L["gamma"] / jnp.sqrt(L["var"] + bn_eps)
        shift = L["beta"] - L["mean"] * scale
        w = L["w"] * scale            # (d_in, d_out) * (1, d_out)
        b = L["b"] * scale + shift
        if idx == 0:
            w = jnp.zeros((d0_pad, w.shape[1]), jnp.float32).at[: L["w"].shape[0]].set(w)
        params += [w.astype(jnp.bfloat16), b.astype(jnp.float32)]

    w_out, b_out = head
    n = w_out.shape[1]
    w_p = jnp.zeros((w_out.shape[0], n_out_pad), jnp.float32).at[:, :n].set(w_out)
    b_p = jnp.zeros((1, n_out_pad), jnp.float32).at[:, :n].set(b_out)
    params += [w_p.astype(jnp.bfloat16), b_p]
    return params


# ----------------------------------------------------------------------------
# References
# ----------------------------------------------------------------------------
def reference_module_forward(x, layers, head, bn_eps=1e-5):
    """Exact f32 replica of the PyTorch module forward (eval mode)."""
    h = x
    for L in layers:
        h = h @ L["w"] + L["b"]
        h = (h - L["mean"]) / jnp.sqrt(L["var"] + bn_eps) * L["gamma"] + L["beta"]
        h = jnp.maximum(h, 0.0)
    w_out, b_out = head
    return jax.nn.sigmoid(h @ w_out + b_out)


def reference_kernel_math(x, params, num_classes, d0_orig):
    """Same bf16/f32 numeric recipe as the kernel, in plain JAX."""
    d0_pad = params[0].shape[0]
    h = jnp.zeros((x.shape[0], d0_pad), jnp.float32).at[:, :d0_orig].set(x)
    for i in range(4):
        w, b = params[2 * i], params[2 * i + 1]
        h = jnp.dot(h.astype(jnp.bfloat16), w, preferred_element_type=jnp.float32)
        h = jnp.maximum(h + b, 0.0)
    w, b = params[-2], params[-1]
    out = jax.nn.sigmoid(
        jnp.dot(h.astype(jnp.bfloat16), w, preferred_element_type=jnp.float32) + b)
    return out[:, :num_classes]


if __name__ == "__main__":
    # Module-consistent small shapes:
    #   input_dim=16, 3 sparse features, emb_size=8 -> input_dims = 40
    #   hid_dims = [256, 128, 64, 32], num_classes = 1, batch = 8
    input_dim = 16
    num_sparse = 3
    emb_size = 8
    input_dims = input_dim + num_sparse * emb_size
    hid_dims = [256, 128, 64, 32]
    num_classes = 1
    batch = 8

    key = jax.random.PRNGKey(0)
    key, kx = jax.random.split(key)
    x = jax.random.normal(kx, (batch, input_dims), jnp.float32)

    layers, head = make_torch_like_params(key, input_dims, hid_dims, num_classes)
    params = prepare_kernel_params(layers, head)

    out = cvr_network_forward(x, params, num_classes=num_classes)
    out = jax.block_until_ready(out)
    assert out.shape == (batch, num_classes)

    # 1) Tight check against the identical bf16/f32 math.
    ref_k = reference_kernel_math(x, params, num_classes, input_dims)
    err_k = float(jnp.max(jnp.abs(out - ref_k)))
    assert err_k < 5e-3, f"kernel-math mismatch: max abs err = {err_k}"

    # 2) Looser check against the exact f32 PyTorch-module semantics
    #    (difference is only bf16 weight/activation rounding).
    ref_m = reference_module_forward(x, layers, head)
    err_m = float(jnp.max(jnp.abs(out - ref_m)))
    assert err_m < 3e-2, f"module mismatch: max abs err = {err_m}"

    print("KERNEL_OK")
</pallas_src>

<mosaic_0001>
module attributes {stable_mosaic.version = 11 : i64} {
  func.func @cvr_mlp_kernel(%arg0: i32, %arg1: memref<8x128xf32, #tpu.memory_space<vmem>>, %arg2: memref<128x256xbf16, #tpu.memory_space<vmem>>, %arg3: memref<1x256xf32, #tpu.memory_space<vmem>>, %arg4: memref<256x128xbf16, #tpu.memory_space<vmem>>, %arg5: memref<1x128xf32, #tpu.memory_space<vmem>>, %arg6: memref<128x64xbf16, #tpu.memory_space<vmem>>, %arg7: memref<1x64xf32, #tpu.memory_space<vmem>>, %arg8: memref<64x32xbf16, #tpu.memory_space<vmem>>, %arg9: memref<1x32xf32, #tpu.memory_space<vmem>>, %arg10: memref<32x128xbf16, #tpu.memory_space<vmem>>, %arg11: memref<1x128xf32, #tpu.memory_space<vmem>>, %arg12: memref<8x128xf32, #tpu.memory_space<vmem>>) attributes {dimension_semantics = [#tpu.dimension_semantics<parallel>], iteration_bounds = array<i64: 1>, scalar_prefetch = 0 : i64, scratch_operands = 0 : i64, tpu.core_type = #tpu.core_type<tc>, window_params = [{transform_indices = @transform_0, window_bounds = array<i64: 8, 128>}, {pipeline_mode = #tpu.pipeline_mode<synchronous>, transform_indices = @transform_1, window_bounds = array<i64: 128, 256>}, {pipeline_mode = #tpu.pipeline_mode<synchronous>, transform_indices = @transform_2, window_bounds = array<i64: 1, 256>}, {pipeline_mode = #tpu.pipeline_mode<synchronous>, transform_indices = @transform_3, window_bounds = array<i64: 256, 128>}, {pipeline_mode = #tpu.pipeline_mode<synchronous>, transform_indices = @transform_4, window_bounds = array<i64: 1, 128>}, {pipeline_mode = #tpu.pipeline_mode<synchronous>, transform_indices = @transform_5, window_bounds = array<i64: 128, 64>}, {pipeline_mode = #tpu.pipeline_mode<synchronous>, transform_indices = @transform_6, window_bounds = array<i64: 1, 64>}, {pipeline_mode = #tpu.pipeline_mode<synchronous>, transform_indices = @transform_7, window_bounds = array<i64: 64, 32>}, {pipeline_mode = #tpu.pipeline_mode<synchronous>, transform_indices = @transform_8, window_bounds = array<i64: 1, 32>}, {pipeline_mode = #tpu.pipeline_mode<synchronous>, transform_indices = @transform_9, window_bounds = array<i64: 32, 128>}, {pipeline_mode = #tpu.pipeline_mode<synchronous>, transform_indices = @transform_10, window_bounds = array<i64: 1, 128>}, {transform_indices = @transform_11, window_bounds = array<i64: 8, 128>}]} {
    %c0 = arith.constant 0 : index
    %c0_0 = arith.constant 0 : index
    %0 = vector.load %arg1[%c0, %c0_0] : memref<8x128xf32, #tpu.memory_space<vmem>>, vector<8x128xf32>
    %1 = arith.truncf %0 : vector<8x128xf32> to vector<8x128xbf16>
    %c0_1 = arith.constant 0 : index
    %c0_2 = arith.constant 0 : index
    %2 = vector.load %arg2[%c0_1, %c0_2] : memref<128x256xbf16, #tpu.memory_space<vmem>>, vector<128x256xbf16>
    %cst = arith.constant dense<0.000000e+00> : vector<8x256xf32>
    %3 = tpu.matmul %1, %2, %cst {dimension_numbers = #tpu.dot_dimension_numbers<[1], [0], [0], [1], [0, 0, 1, 1], [], []>} : vector<8x128xbf16>, vector<128x256xbf16>, vector<8x256xf32> -> vector<8x256xf32>
    %c0_3 = arith.constant 0 : index
    %c0_4 = arith.constant 0 : index
    %4 = vector.load %arg3[%c0_3, %c0_4] : memref<1x256xf32, #tpu.memory_space<vmem>>, vector<1x256xf32>
    %5 = vector.broadcast %4 : vector<1x256xf32> to vector<8x256xf32>
    %6 = arith.addf %3, %5 : vector<8x256xf32>
    %cst_5 = arith.constant 0.000000e+00 : f32
    %7 = vector.broadcast %cst_5 : f32 to vector<8x256xf32>
    %8 = arith.maximumf %6, %7 : vector<8x256xf32>
    %9 = arith.truncf %8 : vector<8x256xf32> to vector<8x256xbf16>
    %c0_6 = arith.constant 0 : index
    %c0_7 = arith.constant 0 : index
    %10 = vector.load %arg4[%c0_6, %c0_7] : memref<256x128xbf16, #tpu.memory_space<vmem>>, vector<256x128xbf16>
    %cst_8 = arith.constant dense<0.000000e+00> : vector<8x128xf32>
    %11 = tpu.matmul %9, %10, %cst_8 {dimension_numbers = #tpu.dot_dimension_numbers<[1], [0], [0], [1], [0, 0, 1, 1], [], []>} : vector<8x256xbf16>, vector<256x128xbf16>, vector<8x128xf32> -> vector<8x128xf32>
    %c0_9 = arith.constant 0 : index
    %c0_10 = arith.constant 0 : index
    %12 = vector.load %arg5[%c0_9, %c0_10] : memref<1x128xf32, #tpu.memory_space<vmem>>, vector<1x128xf32>
    %13 = vector.broadcast %12 : vector<1x128xf32> to vector<8x128xf32>
    %14 = arith.addf %11, %13 : vector<8x128xf32>
    %cst_11 = arith.constant 0.000000e+00 : f32
    %15 = vector.broadcast %cst_11 : f32 to vector<8x128xf32>
    %16 = arith.maximumf %14, %15 : vector<8x128xf32>
    %17 = arith.truncf %16 : vector<8x128xf32> to vector<8x128xbf16>
    %c0_12 = arith.constant 0 : index
    %c0_13 = arith.constant 0 : index
    %18 = vector.load %arg6[%c0_12, %c0_13] : memref<128x64xbf16, #tpu.memory_space<vmem>>, vector<128x64xbf16>
    %cst_14 = arith.constant dense<0.000000e+00> : vector<8x64xf32>
    %19 = tpu.matmul %17, %18, %cst_14 {dimension_numbers = #tpu.dot_dimension_numbers<[1], [0], [0], [1], [0, 0, 1, 1], [], []>} : vector<8x128xbf16>, vector<128x64xbf16>, vector<8x64xf32> -> vector<8x64xf32>
    %c0_15 = arith.constant 0 : index
    %c0_16 = arith.constant 0 : index
    %20 = vector.load %arg7[%c0_15, %c0_16] : memref<1x64xf32, #tpu.memory_space<vmem>>, vector<1x64xf32>
    %21 = vector.broadcast %20 : vector<1x64xf32> to vector<8x64xf32>
    %22 = arith.addf %19, %21 : vector<8x64xf32>
    %cst_17 = arith.constant 0.000000e+00 : f32
    %23 = vector.broadcast %cst_17 : f32 to vector<8x64xf32>
    %24 = arith.maximumf %22, %23 : vector<8x64xf32>
    %25 = arith.truncf %24 : vector<8x64xf32> to vector<8x64xbf16>
    %c0_18 = arith.constant 0 : index
    %c0_19 = arith.constant 0 : index
    %26 = vector.load %arg8[%c0_18, %c0_19] : memref<64x32xbf16, #tpu.memory_space<vmem>>, vector<64x32xbf16>
    %cst_20 = arith.constant dense<0.000000e+00> : vector<8x32xf32>
    %27 = tpu.matmul %25, %26, %cst_20 {dimension_numbers = #tpu.dot_dimension_numbers<[1], [0], [0], [1], [0, 0, 1, 1], [], []>} : vector<8x64xbf16>, vector<64x32xbf16>, vector<8x32xf32> -> vector<8x32xf32>
    %c0_21 = arith.constant 0 : index
    %c0_22 = arith.constant 0 : index
    %28 = vector.load %arg9[%c0_21, %c0_22] : memref<1x32xf32, #tpu.memory_space<vmem>>, vector<1x32xf32>
    %29 = vector.broadcast %28 : vector<1x32xf32> to vector<8x32xf32>
    %30 = arith.addf %27, %29 : vector<8x32xf32>
    %cst_23 = arith.constant 0.000000e+00 : f32
    %31 = vector.broadcast %cst_23 : f32 to vector<8x32xf32>
    %32 = arith.maximumf %30, %31 : vector<8x32xf32>
    %33 = arith.truncf %32 : vector<8x32xf32> to vector<8x32xbf16>
    %c0_24 = arith.constant 0 : index
    %c0_25 = arith.constant 0 : index
    %34 = vector.load %arg10[%c0_24, %c0_25] : memref<32x128xbf16, #tpu.memory_space<vmem>>, vector<32x128xbf16>
    %cst_26 = arith.constant dense<0.000000e+00> : vector<8x128xf32>
    %35 = tpu.matmul %33, %34, %cst_26 {dimension_numbers = #tpu.dot_dimension_numbers<[1], [0], [0], [1], [0, 0, 1, 1], [], []>} : vector<8x32xbf16>, vector<32x128xbf16>, vector<8x128xf32> -> vector<8x128xf32>
    %c0_27 = arith.constant 0 : index
    %c0_28 = arith.constant 0 : index
    %36 = vector.load %arg11[%c0_27, %c0_28] : memref<1x128xf32, #tpu.memory_space<vmem>>, vector<1x128xf32>
    %37 = vector.broadcast %36 : vector<1x128xf32> to vector<8x128xf32>
    %38 = arith.addf %35, %37 : vector<8x128xf32>
    %39 = arith.negf %38 : vector<8x128xf32>
    %40 = math.exp %39 : vector<8x128xf32>
    %cst_29 = arith.constant 1.000000e+00 : f32
    %41 = vector.broadcast %cst_29 : f32 to vector<8x128xf32>
    %42 = arith.addf %41, %40 : vector<8x128xf32>
    %43 = arith.divf %41, %42 : vector<8x128xf32>
    %c0_30 = arith.constant 0 : index
    %c0_31 = arith.constant 0 : index
    %44 = vector.load %arg12[%c0_30, %c0_31] : memref<8x128xf32, #tpu.memory_space<vmem>>, vector<8x128xf32>
    tpu.vector_store %arg12[%c0_30, %c0_31], %43 {strides = array<i32>} : memref<8x128xf32, #tpu.memory_space<vmem>>, vector<8x128xf32>,
    return
  }
  func.func @transform_0(%arg0: i32) -> (i32, i32) {
    %c0_i32 = arith.constant 0 : i32
    %c0_i32_0 = arith.constant 0 : i32
    return %arg0, %c0_i32 : i32, i32
  }
  func.func @transform_1(%arg0: i32) -> (i32, i32) {
    %c0_i32 = arith.constant 0 : i32
    %c0_i32_0 = arith.constant 0 : i32
    %c0_i32_1 = arith.constant 0 : i32
    return %c0_i32, %c0_i32_0 : i32, i32
  }
  func.func @transform_2(%arg0: i32) -> (i32, i32) {
    %c0_i32 = arith.constant 0 : i32
    %c0_i32_0 = arith.constant 0 : i32
    %c0_i32_1 = arith.constant 0 : i32
    return %c0_i32, %c0_i32_0 : i32, i32
  }
  func.func @transform_3(%arg0: i32) -> (i32, i32) {
    %c0_i32 = arith.constant 0 : i32
    %c0_i32_0 = arith.constant 0 : i32
    %c0_i32_1 = arith.constant 0 : i32
    return %c0_i32, %c0_i32_0 : i32, i32
  }
  func.func @transform_4(%arg0: i32) -> (i32, i32) {
    %c0_i32 = arith.constant 0 : i32
    %c0_i32_0 = arith.constant 0 : i32
    %c0_i32_1 = arith.constant 0 : i32
    return %c0_i32, %c0_i32_0 : i32, i32
  }
  func.func @transform_5(%arg0: i32) -> (i32, i32) {
    %c0_i32 = arith.constant 0 : i32
    %c0_i32_0 = arith.constant 0 : i32
    %c0_i32_1 = arith.constant 0 : i32
    return %c0_i32, %c0_i32_0 : i32, i32
  }
  func.func @transform_6(%arg0: i32) -> (i32, i32) {
    %c0_i32 = arith.constant 0 : i32
    %c0_i32_0 = arith.constant 0 : i32
    %c0_i32_1 = arith.constant 0 : i32
    return %c0_i32, %c0_i32_0 : i32, i32
  }
  func.func @transform_7(%arg0: i32) -> (i32, i32) {
    %c0_i32 = arith.constant 0 : i32
    %c0_i32_0 = arith.constant 0 : i32
    %c0_i32_1 = arith.constant 0 : i32
    return %c0_i32, %c0_i32_0 : i32, i32
  }
  func.func @transform_8(%arg0: i32) -> (i32, i32) {
    %c0_i32 = arith.constant 0 : i32
    %c0_i32_0 = arith.constant 0 : i32
    %c0_i32_1 = arith.constant 0 : i32
    return %c0_i32, %c0_i32_0 : i32, i32
  }
  func.func @transform_9(%arg0: i32) -> (i32, i32) {
    %c0_i32 = arith.constant 0 : i32
    %c0_i32_0 = arith.constant 0 : i32
    %c0_i32_1 = arith.constant 0 : i32
    return %c0_i32, %c0_i32_0 : i32, i32
  }
  func.func @transform_10(%arg0: i32) -> (i32, i32) {
    %c0_i32 = arith.constant 0 : i32
    %c0_i32_0 = arith.constant 0 : i32
    %c0_i32_1 = arith.constant 0 : i32
    return %c0_i32, %c0_i32_0 : i32, i32
  }
  func.func @transform_11(%arg0: i32) -> (i32, i32) {
    %c0_i32 = arith.constant 0 : i32
    %c0_i32_0 = arith.constant 0 : i32
    return %arg0, %c0_i32 : i32, i32
  }
}

</mosaic_0001>

<bundles_post_ra>
// kernel: tpu_custom_call.1
= control target key start
LH: loop header
LB: loop body
LE: loop exit
PB: predicated region body
PF: predicated region fallthrough
CT: control target
= control target key end

     0   :  { %16 = vsyncpa [#allocation3], 0  ;;  %s1041_s0 = inlined_call_operand.vmem [shape: f32[8,128], index: 0, kind: input, shape index: {}]   ;;  %s1042_s1 = inlined_call_operand.hbm [shape: bf16[128,256], index: 1, kind: input, shape index: {}]   ;;  %s1043_s2 = inlined_call_operand.vmem [shape: f32[1,256], index: 2, kind: input, shape index: {}]   ;;  %s1044_s3 = inlined_call_operand.hbm [shape: bf16[256,128], index: 3, kind: input, shape index: {}]   ;;  %s1045_s4 = inlined_call_operand.vmem [shape: f32[1,128], index: 4, kind: input, shape index: {}]   ;;  %s1046_s5 = inlined_call_operand.vmem [shape: bf16[128,64], index: 5, kind: input, shape index: {}]   ;;  %s1047_s6 = inlined_call_operand.vmem [shape: f32[1,64], index: 6, kind: input, shape index: {}]   ;;  %s1048_s7 = inlined_call_operand.vmem [shape: bf16[64,32], index: 7, kind: input, shape index: {}]   ;;  %s1049_s8 = inlined_call_operand.vmem [shape: f32[1,32], index: 8, kind: input, shape index: {}]   ;;  %s1050_s9 = inlined_call_operand.vmem [shape: bf16[32,128], index: 9, kind: input, shape index: {}]   ;;  %s1051_s10 = inlined_call_operand.vmem [shape: f32[1,128], index: 10, kind: input, shape index: {}]   ;;  %s1052_s11 = inlined_call_operand.hbm [shape: f32[8,128], index: 11, kind: output, shape index: {}]  }
   0x1   :  { %17 = vsyncpa [#allocation6], 0 }
   0x2   :  { %18 = vsyncpa [#allocation4], 0  ;;  %s25_s19 = sshll.u32 %s1042_s1, 4  ;;  %s905_s20 = smov [#allocation2]   ;;  %s26_s19 = int_to_ptr.hbm [resolvable:$true] %s25_s19 }
   0x3   :  { %s27_s21 = sshll.u32 %s905_s20, 4  ;;  %s40_s24 = sshll.u32 %s1044_s3, 4  ;;  %s28_s21 = int_to_ptr.vmem [resolvable:$true] %s27_s21  ;;  %s41_s24 = int_to_ptr.hbm [resolvable:$true] %s40_s24 }
   0x4   :  { %s906_s25 = smov 128   ;;  %s907_s26 = smov 8  }
   0x5   :  { %33 = dma.hbm_to_vmem [thread:$0]  %s26_s19, 2048, %s28_s21, [#allocation3], %s906_s25, %s906_s25, %s907_s26  }
   0x6   :  { %s908_s27 = smov [#allocation5]   ;;  %s909_s29 = smov 64  }
   0x7   :  { %s42_s28 = sshll.u32 %s908_s27, 4  ;;  %s910_s30 = smov 4   ;;  %s43_s28 = int_to_ptr.vmem [resolvable:$true] %s42_s28 }
   0x8   :  { %48 = dma.hbm_to_vmem [thread:$0]  %s41_s24, 2048, %s43_s28, [#allocation6], %s909_s29, %s909_s29, %s910_s30  }
   0x9   :  { %899 = dma.done.wait [#allocation3], 2048  }
   0xa   :  { %900 = vsyncadd [#allocation3], 4294965248 }
   0xb   :  { %901 = dma.done.wait [#allocation6], 2048  }
   0xc   :  { %902 = vsyncadd [#allocation6], 4294965248  ;;  %v637_v0 = vld [vmem:[#allocation2 + $0x70] sm:$0xf]  ;;  %v781_v1 = vld [vmem:[#allocation2 + $0x74] sm:$0xf0] }
   0xd   :  { %v780_v2 = vld [vmem:[#allocation2 + $0x74] sm:$0xf]  ;;  %v638_v3 = vor.u32 %v781_v1, %v637_v0  ;;  %v639_v4 = vld [vmem:[#allocation2 + $0x78] sm:$0xf0]  ;;  %v629_v5 = vld [vmem:[#allocation2 + $0x60] sm:$0xf] }
   0xe   :  { %v779_v6 = vld [vmem:[#allocation2 + $0x64] sm:$0xf0]  ;;  %v642_v7 = vor.u32 %v780_v2, %v639_v4  ;;  %v778_v8 = vld [vmem:[#allocation2 + $0x64] sm:$0xf]  ;;  %v631_v9 = vld [vmem:[#allocation2 + $0x68] sm:$0xf0] }
   0xf   :  { %176 = vmatpush.bf16.msra.mxu0 %v638_v3  ;;  %v630_v10 = vor.u32 %v779_v6, %v629_v5  ;;  %v634_v11 = vor.u32 %v778_v8, %v631_v9  ;;  %v621_v12 = vld [vmem:[#allocation2 + $0x50] sm:$0xf]  ;;  %v777_v13 = vld [vmem:[#allocation2 + $0x54] sm:$0xf0]  ;;  %v776_v14 = vld [vmem:[#allocation2 + $0x54] sm:$0xf] }
  0x10   :  { %189 = vmatpush.bf16.msra.mxu1 %v642_v7  ;;  %v623_v15 = vld [vmem:[#allocation2 + $0x58] sm:$0xf0]  ;;  %v622_v16 = vor.u32 %v777_v13, %v621_v12  ;;  %v613_v18 = vld [vmem:[#allocation2 + $0x40] sm:$0xf]  ;;  %v775_v19 = vld [vmem:[#allocation2 + $0x44] sm:$0xf0] }
  0x11   :  { %v626_v17 = vor.u32 %v776_v14, %v623_v15  ;;  %v774_v20 = vld [vmem:[#allocation2 + $0x44] sm:$0xf]  ;;  %v615_v21 = vld [vmem:[#allocation2 + $0x48] sm:$0xf0]  ;;  %v614_v22 = vor.u32 %v775_v19, %v613_v18  ;;  %v789_v23 = vld [vmem:[#allocation5 + $0x38] sm:$0xff]  ;;  %vm485_vm0 = vcmask 523264  }
  0x12   :  { %v797_v24 = vld [vmem:[#allocation5 + $0x78] sm:$0xff]  ;;  %v618_v25 = vor.u32 %v774_v20, %v615_v21  ;;  %v605_v26 = vld [vmem:[#allocation2 + $0x30] sm:$0xf]  ;;  %v772_v28 = vld [vmem:[#allocation2 + $0x34] sm:$0xf]  ;;  %338 = vmatpush.bf16.msra.mxu2 %v789_v23  ;;  %vm524_vm1 = vcmask 261120  }
  0x13   :  { %177 = vmatpush.bf16.msra.mxu0 %v630_v10  ;;  %v773_v27 = vld [vmem:[#allocation2 + $0x34] sm:$0xf0]  ;;  %v607_v29 = vld [vmem:[#allocation2 + $0x38] sm:$0xf0]  ;;  %351 = vmatpush.bf16.msra.mxu3 %v797_v24  ;;  %v788_v30 = vld [vmem:[#allocation5 + $0x30] sm:$0xff] }
  0x14   :  { %190 = vmatpush.bf16.msra.mxu1 %v634_v11  ;;  %v796_v31 = vld [vmem:[#allocation5 + $0x70] sm:$0xff]  ;;  %v597_v32 = vld [vmem:[#allocation2 + $0x20] sm:$0xf]  ;;  %v606_v33 = vor.u32 %v773_v27, %v605_v26  ;;  %v771_v34 = vld [vmem:[#allocation2 + $0x24] sm:$0xf0]  ;;  %v610_v35 = vor.u32 %v772_v28, %v607_v29 }
  0x15   :  { %v770_v36 = vld [vmem:[#allocation2 + $0x24] sm:$0xf]  ;;  %v599_v37 = vld [vmem:[#allocation2 + $0x28] sm:$0xf0]  ;;  %v598_v40 = vor.u32 %v771_v34, %v597_v32  ;;  %v589_v42 = vld [vmem:[#allocation2 + $0x10] sm:$0xf] }
  0x16   :  { %339 = vmatpush.bf16.msra.mxu2 %v788_v30  ;;  %v787_v38 = vld [vmem:[#allocation5 + $0x28] sm:$0xff]  ;;  %v602_v41 = vor.u32 %v770_v36, %v599_v37  ;;  %v769_v43 = vld [vmem:[#allocation2 + $0x14] sm:$0xf0]  ;;  %v768_v44 = vld [vmem:[#allocation2 + $0x14] sm:$0xf] }
  0x17   :  { %178 = vmatpush.bf16.msra.mxu0 %v622_v16  ;;  %352 = vmatpush.bf16.msra.mxu3 %v796_v31  ;;  %v795_v39 = vld [vmem:[#allocation5 + $0x68] sm:$0xff]  ;;  %v591_v45 = vld [vmem:[#allocation2 + $0x18] sm:$0xf0]  ;;  %v786_v46 = vld [vmem:[#allocation5 + $0x20] sm:$0xff]  ;;  %v590_v48 = vor.u32 %v769_v43, %v589_v42 }
  0x18   :  { %191 = vmatpush.bf16.msra.mxu1 %v626_v17  ;;  %v794_v47 = vld [vmem:[#allocation5 + $0x60] sm:$0xff]  ;;  %v594_v49 = vor.u32 %v768_v44, %v591_v45  ;;  %v767_v51 = vld [vmem:[#allocation2 + $0x4] sm:$0xf0]  ;;  %v583_v53 = vld [vmem:[#allocation2 + $0x8] sm:$0xf0] }
  0x19   :  { %v581_v50 = vld [vmem:[#allocation2] sm:$0xf]  ;;  %v766_v52 = vld [vmem:[#allocation2 + $0x4] sm:$0xf]  ;;  %v785_v54 = vld [vmem:[#allocation5 + $0x18] sm:$0xff] }
  0x1a   :  { %340 = vmatpush.bf16.msra.mxu2 %v787_v38  ;;  %v793_v55 = vld [vmem:[#allocation5 + $0x58] sm:$0xff]  ;;  %v582_v56 = vor.u32 %v767_v51, %v581_v50  ;;  %v72_v57 = vld [vmem:[%s1041_s0] sm:$0xff]  ;;  %v586_v58 = vor.u32 %v766_v52, %v583_v53  ;;  %v784_v59 = vld [vmem:[#allocation5 + $0x10] sm:$0xff] }
  0x1b   :  { %179 = vmatpush.bf16.msra.mxu0 %v614_v22  ;;  %353 = vmatpush.bf16.msra.mxu3 %v795_v39  ;;  %v792_v60 = vld [vmem:[#allocation5 + $0x50] sm:$0xff]  ;;  %v73_v61 = vpack.c.bf16 %v72_v57, %v72_v57  ;;  %v783_v62 = vld [vmem:[#allocation5 + $0x8] sm:$0xff]  ;;  %v782_v0 = vld [vmem:[#allocation5] sm:$0xff] }
  0x1c   :  { %192 = vmatpush.bf16.msra.mxu1 %v618_v25  ;;  %v791_v63 = vld [vmem:[#allocation5 + $0x48] sm:$0xff]  ;;  %v790_v1 = vld [vmem:[#allocation5 + $0x40] sm:$0xff]  ;;  %v805_v2 = vld [vmem:[%s1046_s5 + $0x38] sm:$0xff] }
  0x1d   :  { %v804_v3 = vld [vmem:[%s1046_s5 + $0x30] sm:$0xff]  ;;  %v803_v4 = vld [vmem:[%s1046_s5 + $0x28] sm:$0xff]  ;;  %v802_v5 = vld [vmem:[%s1046_s5 + $0x20] sm:$0xff] }
  0x1e   :  { %341 = vmatpush.bf16.msra.mxu2 %v786_v46  ;;  %v801_v6 = vld [vmem:[%s1046_s5 + $0x18] sm:$0xff]  ;;  %v90_v7 = vld [vmem:[%s1043_s2] sm:$0x3]  ;;  %v800_v8 = vld [vmem:[%s1046_s5 + $0x10] sm:$0xff] }
  0x1f   :  { %180 = vmatpush.bf16.msra.mxu0 %v606_v33  ;;  %354 = vmatpush.bf16.msra.mxu3 %v794_v47  ;;  %v92_v9 = vperm.slane %v90_v7, 0  ;;  %v93_v10 = vperm.slane %v90_v7, 1  ;;  %v799_v21 = vld [vmem:[%s1046_s5 + $0x8] sm:$0xff]  ;;  %v798_v22 = vld [vmem:[%s1046_s5] sm:$0xff]  ;;  %v809_v23 = vld [vmem:[%s1048_s7 + $0x18] sm:$0xff] }
  0x20   :  { %193 = vmatpush.bf16.msra.mxu1 %v610_v35  ;;  %v808_v24 = vld [vmem:[%s1048_s7 + $0x10] sm:$0xff]  ;;  %v807_v25 = vld [vmem:[%s1048_s7 + $0x8] sm:$0xff]  ;;  %v819_v26 = vld [vmem:[%s1045_s4] ss:$0 sm:$0xff] }
  0x21   :  { %v806_v35 = vld [vmem:[%s1048_s7] sm:$0xff]  ;;  %v811_v36 = vld [vmem:[%s1050_s9 + $0x8] sm:$0xff] }
  0x22   :  { %342 = vmatpush.bf16.msra.mxu2 %v785_v54  ;;  %v810_v37 = vld [vmem:[%s1050_s9] sm:$0xff] }
  0x23   :  { %181 = vmatpush.bf16.msra.mxu0 %v598_v40  ;;  %355 = vmatpush.bf16.msra.mxu3 %v793_v55  ;;  %v820_v38 = vld [vmem:[%s1047_s6] ss:$0 sm:$0xff] }
  0x24   :  { %194 = vmatpush.bf16.msra.mxu1 %v602_v41  ;;  %v821_v44 = vld [vmem:[%s1049_s8] ss:$0 sm:$0xff]  ;;  %s911_s8 = smov [#allocation7]  }
  0x25   :  { %v822_v50 = vld [vmem:[%s1051_s10] ss:$0 sm:$0xff]  ;;  %s566_s21 = sshll.u32 %s911_s8, 4  ;;  %s568_s10 = sshll.u32 %s1052_s11, 4  ;;  %s567_s21 = int_to_ptr.vmem [resolvable:$true] %s566_s21  ;;  %s569_s10 = int_to_ptr.hbm [resolvable:$true] %s568_s10 }
  0x26   :  { %343 = vmatpush.bf16.msra.mxu2 %v784_v59 }
  0x27   :  { %182 = vmatpush.bf16.msra.mxu0 %v590_v48  ;;  %356 = vmatpush.bf16.msra.mxu3 %v792_v60 }
  0x28   :  { %195 = vmatpush.bf16.msra.mxu1 %v594_v49 }
  0x2a   :  { %344 = vmatpush.bf16.msra.mxu2 %v783_v62 }
  0x2b   :  { %183 = vmatpush.bf16.msra.mxu0 %v582_v56  ;;  %357 = vmatpush.bf16.msra.mxu3 %v791_v63 }
  0x2c   :  { %196 = vmatpush.bf16.msra.mxu1 %v586_v58 }
  0x2e   :  { %184 = vmatmul.bf16.vlgmr.msra.gmra.mxu0 %v73_v61  ;;  %345 = vmatpush.bf16.msra.mxu2 %v782_v0 }
  0x2f   :  { %197 = vmatmul.bf16.vlgmr.msra.gmra.mxu1 %v73_v61  ;;  %358 = vmatpush.bf16.msra.mxu3 %v790_v1 }
  0x30   :  { %434 = vmatpush.bf16.msrb.mxu0 %v805_v2  ;;  %493 = vmatpush.bf16.msrb.mxu1 %v809_v23 }
  0x32   :  { %534 = vmatpush.bf16.msrb.mxu2 %v811_v36 }
  0x34   :  { %435 = vmatpush.bf16.msrb.mxu0 %v804_v3  ;;  %494 = vmatpush.bf16.msrb.mxu1 %v808_v24 }
  0x36   :  { %535 = vmatpush.bf16.msrb.mxu2 %v810_v37 }
  0x38   :  { %436 = vmatpush.bf16.msrb.mxu0 %v803_v4  ;;  %495 = vmatpush.bf16.msrb.mxu1 %v807_v25 }
  0x3c   :  { %437 = vmatpush.bf16.msrb.mxu0 %v802_v5  ;;  %496 = vmatpush.bf16.msrb.mxu1 %v806_v35 }
  0x40   :  { %438 = vmatpush.bf16.msrb.mxu0 %v801_v6 }
  0x44   :  { %439 = vmatpush.bf16.msrb.mxu0 %v800_v8 }
  0x48   :  { %440 = vmatpush.bf16.msrb.mxu0 %v799_v21 }
  0x4c   :  { %441 = vmatpush.bf16.msrb.mxu0 %v798_v22 }
  0xab   :  { %v185_v11 = vpop.f32.mrf.mxu0 }
  0xac   :  { %v186_v12 = vadd.f32 %v185_v11, %v92_v9  ;;  %v198_v13 = vpop.f32.mrf.mxu1 }
  0xad   :  { %v199_v14 = vadd.f32 %v198_v13, %v93_v10 }
  0xae   :  { %v202_v15 = vmax.f32 %v186_v12, 0.0 }
  0xaf   :  { %v203_v16 = vmax.f32 %v199_v14, 0.0 }
  0xb0   :  { %v204_v17 = vpack.c.bf16 %v202_v15, %v202_v15 }
  0xb1   :  { %v205_v18 = vpack.c.bf16 %v203_v16, %v203_v16 }
  0xb2   :  { %346 = vmatmul.bf16.vlgmr.msra.gmra.mxu2 %v204_v17 }
  0xb3   :  { %359 = vmatmul.bf16.vlgmr.msra.gmra.mxu3 %v205_v18  ;;  %v187_v19 = vpop.f32.mrf.mxu0 }
  0xb4   :  { %v200_v20 = vpop.f32.mrf.mxu1 }
 0x135   :  { %v347_v27 = vpop.f32.mrf.mxu2 }
 0x136   :  { %v348_v28 = vadd.f32 %v819_v26, %v347_v27  ;;  %v360_v29 = vpop.f32.mrf.mxu3 }
 0x138   :  { %v361_v30 = vadd.f32 %v360_v29, %v348_v28 }
 0x13a   :  { %v364_v31 = vmax.f32 %v361_v30, 0.0 }
 0x13c   :  { %v365_v32 = vpack.c.bf16 %v364_v31, %v364_v31 }
 0x13d   :  { %v349_v33 = vpop.f32.mrf.mxu2 }
 0x13e   :  { %v362_v34 = vpop.f32.mrf.mxu3  ;;  %442 = vmatmul.bf16.vlgmr.msrb.gmra.mxu0 %v365_v32 }
 0x1bb   :  { %v443_v39 = vpop.f32.mrf.mxu0 }
 0x1bc   :  { %v444_v40 = vadd.f32 %v820_v38, %v443_v39 }
 0x1be   :  { %v447_v41 = vmax.f32 %v444_v40, 0.0 }
 0x1c0   :  { %v448_v42 = vpack.c.bf16 %v447_v41, %v447_v41 }
 0x1c2   :  { %755 = vmatmul.msk.bf16.vlgmr.msrb.gmra.mxu1 %vm485_vm0, %v448_v42 }
 0x1c3   :  { %v445_v43 = vpop.f32.mrf.mxu0 }
 0x23f   :  { %v498_v45 = vpop.f32.mrf.mxu1 }
 0x240   :  { %v499_v46 = vadd.f32 %v821_v44, %v498_v45 }
 0x242   :  { %v502_v47 = vmax.f32 %v499_v46, 0.0 }
 0x244   :  { %v503_v48 = vpack.c.bf16 %v502_v47, %v502_v47 }
 0x246   :  { %764 = vmatmul.msk.bf16.vlgmr.msrb.gmra.mxu2 %vm524_vm1, %v503_v48 }
 0x247   :  { %v500_v49 = vpop.f32.mrf.mxu1 }
 0x2c9   :  { %v537_v51 = vpop.f32.mrf.mxu2 }
 0x2ca   :  { %v538_v52 = vadd.f32 %v822_v50, %v537_v51 }
 0x2cc   :  { %v765_v53 = vmul.f32 -1.442695, %v538_v52 }
 0x2ce   :  { %823 = vpow2.f32 %v765_v53 }
 0x2d1   :  { %v539_v54 = vpop.f32.mrf.mxu2 }
 0x2d4   :  { %v824_v55 = vpop.eup %823 }
 0x2d5   :  { %v544_v56 = vadd.f32 1.0, %v824_v55 }
 0x2d7   :  { %825 = vrcp.f32 %v544_v56  ;;  %v556_v60 = vand.u32 2147483648, %v544_v56  ;;  %v554_v62 = vand.u32 2147483647, %v544_v56  ;;  %vm550_vm3 = vweird.f32 %v544_v56 }
 0x2d9   :  { %v557_v0 = vor.u32 1.1754944e-38, %v556_v60  ;;  %vm555_vm5 = vcmp.eq.f32.partialorder %v554_v62, 8.507059e+37 }
 0x2dd   :  { %v826_v57 = vpop.eup %825 }
 0x2de   :  { %v546_v58 = vmul.f32 %v826_v57, %v544_v56  ;;  %vm551_vm2 = vweird.f32 %v826_v57 }
 0x2df   :  { %vm552_vm4 = vmor %vm550_vm3, %vm551_vm2 }
 0x2e0   :  { %v547_v59 = vsub.f32 1.0, %v546_v58 }
 0x2e2   :  { %v548_v61 = vmul.f32 %v826_v57, %v547_v59 }
 0x2e4   :  { %v549_v63 = vadd.f32 %v826_v57, %v548_v61 }
 0x2e6   :  { %v553_v1 = vsel %vm552_vm4, %v826_v57, %v549_v63 }
 0x2e7   :  { %v558_v2 = vsel %vm555_vm5, %v557_v0, %v553_v1 }
 0x2e8   :  { %560 = vst [vmem:[#allocation7] sm:$0xff] %v558_v2 }
 0x2e9   :  { %571 = dma.vmem_to_hbm [thread:$0]  %s567_s21, 128, %s569_s10, [#allocation4]  }
 0x2ea   :  { %903 = dma.done.wait [#allocation4], 128  }
 0x2eb   :  { %904 = vsyncadd [#allocation4], 4294967168 }
 0x2ec   :  { %576 = vsyncpa [#allocation3], 1 }
 0x2ed   :  { %577 = vsyncpa [#allocation6], 1 }
 0x2ee   :  { %578 = vsyncpa [#allocation4], 1 }

</bundles_post_ra>
